<compile_context>
chip_gen: v5e
topology: v5e:2x2
jax: 0.10.0
libtpu: 0.0.40
codegen_flags: <defaults>
</compile_context>

<pallas_src>
import functools

import jax
import jax.numpy as jnp
from jax.experimental import pallas as pl
from jax.experimental.pallas import tpu as pltpu

_PAIRWISE_EPS = 1e-6  # matches torch.nn.functional.pairwise_distance default


def _round_up(x, m):
    return ((x + m - 1) // m) * m


def _contrastive_loss_kernel(x1_ref, x2_ref, label_ref, out_ref, acc_ref,
                             *, margin, batch, tile_b, masked):
    i = pl.program_id(0)

    @pl.when(i == 0)
    def _init():
        acc_ref[...] = jnp.zeros_like(acc_ref)

    # Upcast in-kernel (inputs may be bf16 over HBM to halve memory traffic).
    x1 = x1_ref[...].astype(jnp.float32)
    x2 = x2_ref[...].astype(jnp.float32)
    lbl = label_ref[...].astype(jnp.float32)           # (TB, 1)

    # F.pairwise_distance: ||x1 - x2 + eps||_2 along the feature axis.
    diff = x1 - x2 + jnp.float32(_PAIRWISE_EPS)
    dist_sq = jnp.sum(diff * diff, axis=-1, keepdims=True)   # (TB, 1)
    dist = jnp.sqrt(dist_sq)

    # (1 - y) * d^2 + y * clamp(margin - d, 0)^2   (reuse dist_sq, no extra vmul)
    hinge = jnp.maximum(jnp.float32(margin) - dist, 0.0)
    per_sample = (1.0 - lbl) * dist_sq + lbl * (hinge * hinge)  # (TB, 1)

    if masked:
        # Last tile may contain padded rows: drop them from the sum.
        row = i * tile_b + jax.lax.broadcasted_iota(jnp.int32, (tile_b, 1), 0)
        per_sample = jnp.where(row < batch, per_sample, 0.0)

    # Accumulate the tile's contribution (stays in the vector domain).
    acc_ref[...] += jnp.sum(per_sample, axis=0, keepdims=True)  # (1, 1)

    @pl.when(i == pl.num_programs(0) - 1)
    def _finalize():
        # Divide by the true batch size exactly once; single 4-byte writeback.
        out_ref[...] = acc_ref[...] * jnp.float32(1.0 / batch)


def contrastive_loss(output1, output2, label, margin=2.0, *, block_b=None):
    """output1, output2: (B, D); label: (B,) of {0, 1}. Returns scalar f32 loss."""
    B, D = output1.shape
    itemsize = max(jnp.dtype(output1.dtype).itemsize,
                   jnp.dtype(output2.dtype).itemsize)

    # --- batch tile selection --------------------------------------------------
    if block_b is None:
        tb = min(512, _round_up(B, 8))              # amortize per-step overhead
        # VMEM budget: 2 inputs x 2 pipeline buffers x (tb*D*itemsize) <= ~16 MiB,
        # safe under v7x's 32 MiB scoped / 64 MiB physical VMEM.
        budget = 16 * 1024 * 1024
        while tb > 8 and 4 * tb * D * itemsize > budget:
            tb = max(8, _round_up(tb // 2, 8))
    else:
        tb = _round_up(block_b, 8)
    padded_b = _round_up(B, tb)
    num_tiles = padded_b // tb

    # --- pad batch to a whole number of tiles (masked out inside the kernel) ---
    label2d = label.reshape(B, 1).astype(jnp.float32)
    if padded_b != B:
        pad = padded_b - B
        output1 = jnp.pad(output1, ((0, pad), (0, 0)))
        output2 = jnp.pad(output2, ((0, pad), (0, 0)))
        label2d = jnp.pad(label2d, ((0, pad), (0, 0)))

    kernel = functools.partial(
        _contrastive_loss_kernel,
        margin=float(margin), batch=B, tile_b=tb, masked=(padded_b != B),
    )

    out = pl.pallas_call(
        kernel,
        out_shape=jax.ShapeDtypeStruct((1, 1), jnp.float32),
        grid=(num_tiles,),
        in_specs=[
            pl.BlockSpec((tb, D), lambda i: (i, 0)),
            pl.BlockSpec((tb, D), lambda i: (i, 0)),
            pl.BlockSpec((tb, 1), lambda i: (i, 0)),
        ],
        out_specs=pl.BlockSpec((1, 1), lambda i: (0, 0)),
        scratch_shapes=[pltpu.VMEM((1, 1), jnp.float32)],
        compiler_params=pltpu.CompilerParams(
            dimension_semantics=("arbitrary",),        # reduction over batch tiles
            vmem_limit_bytes=32 * 1024 * 1024,         # explicit, v5e/v6e/v7x-safe
        ),
    )(output1, output2, label2d)
    return out[0, 0]


def _reference_loss(output1, output2, label, margin=2.0):
    # Pure-JAX reference mirroring the PyTorch semantics.
    diff = output1.astype(jnp.float32) - output2.astype(jnp.float32) + _PAIRWISE_EPS
    d = jnp.sqrt(jnp.sum(diff * diff, axis=-1))
    lbl = label.astype(jnp.float32)
    return jnp.mean((1.0 - lbl) * d ** 2 + lbl * jnp.maximum(margin - d, 0.0) ** 2)


if __name__ == "__main__":
    key = jax.random.PRNGKey(0)
    k1, k2, k3 = jax.random.split(key, 3)

    # Case 1: small, single tile, no padding.
    B, D = 8, 32
    o1 = jax.random.normal(k1, (B, D), dtype=jnp.float32)
    o2 = jax.random.normal(k2, (B, D), dtype=jnp.float32)
    lbl = jax.random.bernoulli(k3, 0.5, (B,)).astype(jnp.float32)

    loss = jax.block_until_ready(contrastive_loss(o1, o2, lbl, margin=2.0))
    ref = _reference_loss(o1, o2, lbl, margin=2.0)
    assert jnp.allclose(loss, ref, rtol=1e-5, atol=1e-5), (loss, ref)

    # Case 2: multiple grid tiles + padded last tile (B not a multiple of tile).
    B2, D2 = 20, 32
    o1b = jax.random.normal(k1, (B2, D2), dtype=jnp.float32)
    o2b = jax.random.normal(k2, (B2, D2), dtype=jnp.float32)
    lblb = jax.random.bernoulli(k3, 0.5, (B2,)).astype(jnp.float32)

    loss2 = jax.block_until_ready(
        contrastive_loss(o1b, o2b, lblb, margin=2.0, block_b=8))
    ref2 = _reference_loss(o1b, o2b, lblb, margin=2.0)
    assert jnp.allclose(loss2, ref2, rtol=1e-5, atol=1e-5), (loss2, ref2)

    print("KERNEL_OK")
</pallas_src>

<mosaic_0001>
module attributes {stable_mosaic.version = 11 : i64} {
  func.func @_contrastive_loss_kernel(%arg0: i32, %arg1: memref<8x32xf32, #tpu.memory_space<vmem>>, %arg2: memref<8x32xf32, #tpu.memory_space<vmem>>, %arg3: memref<8x1xf32, #tpu.memory_space<vmem>>, %arg4: memref<1x1xf32, #tpu.memory_space<vmem>>, %arg5: memref<1x1xf32, #tpu.memory_space<vmem>>) attributes {dimension_semantics = [#tpu.dimension_semantics<arbitrary>], iteration_bounds = array<i64: 1>, scalar_prefetch = 0 : i64, scratch_operands = 1 : i64, tpu.core_type = #tpu.core_type<tc>, window_params = [{transform_indices = @transform_0, window_bounds = array<i64: 8, 32>}, {transform_indices = @transform_1, window_bounds = array<i64: 8, 32>}, {transform_indices = @transform_2, window_bounds = array<i64: 8, 1>}, {pipeline_mode = #tpu.pipeline_mode<synchronous>, transform_indices = @transform_3, window_bounds = array<i64: 1, 1>}]} {
    %c0_i32 = arith.constant 0 : i32
    %0 = arith.cmpi eq, %arg0, %c0_i32 : i32
    %1 = arith.extui %0 : i1 to i32
    %c0_i32_0 = arith.constant 0 : i32
    %2 = arith.cmpi ne, %1, %c0_i32_0 : i32
    scf.if %2 {
      %cst_17 = arith.constant 0.000000e+00 : f32
      %31 = vector.broadcast %cst_17 : f32 to vector<1x1xf32>
      %c0_18 = arith.constant 0 : index
      %c0_19 = arith.constant 0 : index
      %32 = vector.load %arg5[%c0_18, %c0_19] : memref<1x1xf32, #tpu.memory_space<vmem>>, vector<1x1xf32>
      tpu.vector_store %arg5[%c0_18, %c0_19], %31 {strides = array<i32>} : memref<1x1xf32, #tpu.memory_space<vmem>>, vector<1x1xf32>,
    } else {
    }
    %c0 = arith.constant 0 : index
    %c0_1 = arith.constant 0 : index
    %3 = vector.load %arg1[%c0, %c0_1] : memref<8x32xf32, #tpu.memory_space<vmem>>, vector<8x32xf32>
    %c0_2 = arith.constant 0 : index
    %c0_3 = arith.constant 0 : index
    %4 = vector.load %arg2[%c0_2, %c0_3] : memref<8x32xf32, #tpu.memory_space<vmem>>, vector<8x32xf32>
    %c0_4 = arith.constant 0 : index
    %c0_5 = arith.constant 0 : index
    %5 = vector.load %arg3[%c0_4, %c0_5] : memref<8x1xf32, #tpu.memory_space<vmem>>, vector<8x1xf32>
    %6 = arith.subf %3, %4 : vector<8x32xf32>
    %cst = arith.constant 9.99999997E-7 : f32
    %7 = vector.broadcast %cst : f32 to vector<8x32xf32>
    %8 = arith.addf %6, %7 : vector<8x32xf32>
    %9 = arith.mulf %8, %8 : vector<8x32xf32>
    %cst_6 = arith.constant dense<0.000000e+00> : vector<8xf32>
    %10 = vector.multi_reduction <add>, %9, %cst_6 [1] : vector<8x32xf32> to vector<8xf32>
    %11 = vector.shape_cast %10 : vector<8xf32> to vector<8x1xf32>
    %12 = math.sqrt %11 : vector<8x1xf32>
    %cst_7 = arith.constant 2.000000e+00 : f32
    %13 = vector.broadcast %cst_7 : f32 to vector<8x1xf32>
    %14 = arith.subf %13, %12 : vector<8x1xf32>
    %cst_8 = arith.constant 0.000000e+00 : f32
    %15 = vector.broadcast %cst_8 : f32 to vector<8x1xf32>
    %16 = arith.maximumf %14, %15 : vector<8x1xf32>
    %cst_9 = arith.constant 1.000000e+00 : f32
    %17 = vector.broadcast %cst_9 : f32 to vector<8x1xf32>
    %18 = arith.subf %17, %5 : vector<8x1xf32>
    %19 = arith.mulf %18, %11 : vector<8x1xf32>
    %20 = arith.mulf %16, %16 : vector<8x1xf32>
    %21 = arith.mulf %5, %20 : vector<8x1xf32>
    %22 = arith.addf %19, %21 : vector<8x1xf32>
    %c0_10 = arith.constant 0 : index
    %c0_11 = arith.constant 0 : index
    %23 = vector.load %arg5[%c0_10, %c0_11] : memref<1x1xf32, #tpu.memory_space<vmem>>, vector<1x1xf32>
    %cst_12 = arith.constant dense<0.000000e+00> : vector<1xf32>
    %24 = vector.multi_reduction <add>, %22, %cst_12 [0] : vector<8x1xf32> to vector<1xf32>
    %25 = vector.shape_cast %24 : vector<1xf32> to vector<1x1xf32>
    %26 = arith.addf %23, %25 : vector<1x1xf32>
    %c0_13 = arith.constant 0 : index
    %c0_14 = arith.constant 0 : index
    %27 = vector.load %arg5[%c0_13, %c0_14] : memref<1x1xf32, #tpu.memory_space<vmem>>, vector<1x1xf32>
    tpu.vector_store %arg5[%c0_13, %c0_14], %26 {strides = array<i32>} : memref<1x1xf32, #tpu.memory_space<vmem>>, vector<1x1xf32>,
    %c0_i32_15 = arith.constant 0 : i32
    %28 = arith.cmpi eq, %arg0, %c0_i32_15 : i32
    %29 = arith.extui %28 : i1 to i32
    %c0_i32_16 = arith.constant 0 : i32
    %30 = arith.cmpi ne, %29, %c0_i32_16 : i32
    scf.if %30 {
      %c0_17 = arith.constant 0 : index
      %c0_18 = arith.constant 0 : index
      %31 = vector.load %arg5[%c0_17, %c0_18] : memref<1x1xf32, #tpu.memory_space<vmem>>, vector<1x1xf32>
      %cst_19 = arith.constant 1.250000e-01 : f32
      %32 = vector.broadcast %cst_19 : f32 to vector<1x1xf32>
      %33 = arith.mulf %31, %32 : vector<1x1xf32>
      %c0_20 = arith.constant 0 : index
      %c0_21 = arith.constant 0 : index
      %34 = vector.load %arg4[%c0_20, %c0_21] : memref<1x1xf32, #tpu.memory_space<vmem>>, vector<1x1xf32>
      tpu.vector_store %arg4[%c0_20, %c0_21], %33 {strides = array<i32>} : memref<1x1xf32, #tpu.memory_space<vmem>>, vector<1x1xf32>,
    } else {
    }
    return
  }
  func.func @transform_0(%arg0: i32) -> (i32, i32) {
    %c0_i32 = arith.constant 0 : i32
    %c0_i32_0 = arith.constant 0 : i32
    return %arg0, %c0_i32 : i32, i32
  }
  func.func @transform_1(%arg0: i32) -> (i32, i32) {
    %c0_i32 = arith.constant 0 : i32
    %c0_i32_0 = arith.constant 0 : i32
    return %arg0, %c0_i32 : i32, i32
  }
  func.func @transform_2(%arg0: i32) -> (i32, i32) {
    %c0_i32 = arith.constant 0 : i32
    %c0_i32_0 = arith.constant 0 : i32
    return %arg0, %c0_i32 : i32, i32
  }
  func.func @transform_3(%arg0: i32) -> (i32, i32) {
    %c0_i32 = arith.constant 0 : i32
    %c0_i32_0 = arith.constant 0 : i32
    %c0_i32_1 = arith.constant 0 : i32
    return %c0_i32, %c0_i32_0 : i32, i32
  }
}

</mosaic_0001>

<bundles_post_ra>
// kernel: tpu_custom_call.1
= control target key start
LH: loop header
LB: loop body
LE: loop exit
PB: predicated region body
PF: predicated region fallthrough
CT: control target
= control target key end

     0   :  { %8 = vsyncpa [#allocation4], 0  ;;  %s194_s0 = inlined_call_operand.vmem [shape: f32[8,32], index: 0, kind: input, shape index: {}]   ;;  %s195_s1 = inlined_call_operand.hbm [shape: f32[8,32], index: 1, kind: input, shape index: {}]   ;;  %s196_s2 = inlined_call_operand.vmem [shape: f32[8,1], index: 2, kind: input, shape index: {}]   ;;  %s197_s3 = inlined_call_operand.hbm [shape: f32[1,1], index: 3, kind: output, shape index: {}]  }
   0x1   :  { %9 = vsyncpa [#allocation5], 0  ;;  %s17_s14 = sshll.u32 %s195_s1, 4  ;;  %s156_s15 = smov [#allocation3]   ;;  %s18_s14 = int_to_ptr.hbm [resolvable:$true] %s17_s14 }
   0x2   :  { %s19_s16 = sshll.u32 %s156_s15, 4  ;;  %s20_s16 = int_to_ptr.vmem [resolvable:$true] %s19_s16 }
   0x3   :  { %22 = dma.hbm_to_vmem [thread:$0]  %s18_s14, 128, %s20_s16, [#allocation4]  }
   0x4   :  { %152 = dma.done.wait [#allocation4], 128  }
   0x5   :  { %153 = vsyncadd [#allocation4], 4294967168  ;;  %v35_v0 = vld [vmem:[%s194_s0] sm:$0xff]  ;;  %vm41_vm0 = vcmask 261120   ;;  %vm33_vm1 = vcmask 0   ;;  %v157_v7 = vmov 0.0  }
   0x6   :  { %v36_v1 = vld [vmem:[#allocation3] sm:$0xff]  ;;  %34 = vst.msk [vmem:[#allocation2] sm:$0x1] %vm33_vm1, %v157_v7  ;;  %vm65_vm4 = vcmask 7168   ;;  %s89_s22 = sshll.u32 %s197_s3, 4  ;;  %s90_s22 = int_to_ptr.hbm [resolvable:$true] %s89_s22 }
   0x7   :  { %v38_v2 = vsub.f32 %v35_v0, %v36_v1  ;;  %v37_v17 = vld [vmem:[%s196_s2] sm:$0xff]  ;;  %s158_s2 = smov [#allocation6]  }
   0x8   :  { %v59_v21 = vsub.f32 1.0, %v37_v17  ;;  %s87_s19 = sshll.u32 %s158_s2, 4  ;;  %s88_s19 = int_to_ptr.vmem [resolvable:$true] %s87_s19 }
   0x9   :  { %v39_v3 = vadd.f32 1e-06, %v38_v2 }
   0xb   :  { %v40_v4 = vmul.f32 %v39_v3, %v39_v3 }
   0xd   :  { %v42_v5 = vsel %vm41_vm0, %v40_v4, 0.0  ;;  %v64_v32 = vld [vmem:[#allocation2] sm:$0x1] }
   0xe   :  { %43 = vadd.xlane.f32.xlu0 %v42_v5 }
  0x81   :  { %v44_v6 = vpop.xlane.xlu0 %43 }
  0x82   :  { %102 = vrsqrt.f32 %v44_v6  ;;  %vm52_vm2 = vcmp.eq.f32.partialorder %v44_v6, inf  ;;  %v55_v15 = vand.u32 2147483648, %v44_v6  ;;  %vm54_vm3 = vcmp.eq.f32.partialorder %v44_v6, 0.0 }
  0x83   :  { %v60_v23 = vmul.f32 %v59_v21, %v44_v6 }
  0x88   :  { %v103_v8 = vpop.eup %102 }
  0x89   :  { %v46_v9 = vmul.f32 %v103_v8, %v44_v6 }
  0x8b   :  { %v47_v10 = vmul.f32 %v103_v8, %v46_v9 }
  0x8d   :  { %v48_v11 = vmul.f32 0.5, %v47_v10 }
  0x8f   :  { %v49_v12 = vsub.f32 1.5, %v48_v11 }
  0x91   :  { %v50_v13 = vmul.f32 %v103_v8, %v49_v12 }
  0x93   :  { %v51_v14 = vmul.f32 %v50_v13, %v44_v6 }
  0x95   :  { %v53_v16 = vsel %vm52_vm2, %v44_v6, %v51_v14 }
  0x96   :  { %v56_v18 = vsel %vm54_vm3, %v55_v15, %v53_v16 }
  0x97   :  { %v57_v19 = vsub.f32 2.0, %v56_v18 }
  0x99   :  { %v58_v20 = vmax.f32 %v57_v19, 0.0 }
  0x9b   :  { %v61_v22 = vmul.f32 %v58_v20, %v58_v20 }
  0x9d   :  { %v62_v24 = vmul.f32 %v61_v22, %v37_v17 }
  0x9f   :  { %v63_v25 = vadd.f32 %v62_v24, %v60_v23 }
  0xa1   :  { %v66_v26 = vsel %vm65_vm4, %v63_v25, 0.0 }
  0xa2   :  { %v67_v27 = vrot.slane %v66_v26, 4 }
  0xa4   :  { %v68_v28 = vadd.f32 %v67_v27, %v66_v26 }
  0xa6   :  { %v69_v29 = vrot.slane %v68_v28, 2 }
  0xa8   :  { %v70_v30 = vadd.f32 %v69_v29, %v68_v28 }
  0xaa   :  { %v71_v31 = vrot.slane %v70_v30, 1 }
  0xac   :  { %v72_v33 = vadd.f32 %v71_v31, %v70_v30 }
  0xae   :  { %v73_v34 = vadd.f32 %v72_v33, %v64_v32 }
  0xb0   :  { %75 = vst.msk [vmem:[#allocation2] sm:$0x1] %vm33_vm1, %v73_v34 }
  0xb7   :  { %v79_v35 = vld [vmem:[#allocation2] sm:$0x1] }
  0xb8   :  { %v80_v36 = vmul.f32 0.125, %v79_v35 }
  0xba   :  { %81 = vst.msk [vmem:[#allocation6] sm:$0x1] %vm33_vm1, %v80_v36 }
  0xbb   :  { %92 = dma.vmem_to_hbm [thread:$0]  %s88_s19, 16, %s90_s22, [#allocation5]  }
  0xbc   :  { %154 = dma.done.wait [#allocation5], 16  }
  0xbd   :  { %155 = vsyncadd [#allocation5], 4294967280 }
  0xbe   :  { %97 = vsyncpa [#allocation4], 1 }
  0xbf   :  { %98 = vsyncpa [#allocation5], 1 }

</bundles_post_ra>
